<compile_context>
chip_gen: v7x
topology: tpu7x:2x2x1
jax: 0.10.0
libtpu: 0.0.40
codegen_flags: <defaults>
</compile_context>

<pallas_src>
import functools

import jax
import jax.numpy as jnp
from jax.experimental import pallas as pl
from jax.experimental.pallas import tpu as pltpu


def _layernorm(z, gamma, beta, eps=1e-5):
    mu = jnp.mean(z, axis=-1, keepdims=True)
    var = jnp.mean((z - mu) ** 2, axis=-1, keepdims=True)
    return (z - mu) * jax.lax.rsqrt(var + eps) * gamma + beta


def _attention_block_kernel(
    x_ref,                       # (S, E)   current batch element
    wq_ref, wk_ref, wv_ref,      # (E, E)   pre-transposed (x @ w == F.linear)
    bq_ref, bk_ref, bv_ref,      # (1, E)
    wo_ref, bo_ref,              # (E, E) pre-transposed, (1, E)
    g1_ref, b1_ref,              # (1, E)   norm1 gamma/beta
    g2_ref, b2_ref,              # (1, E)   norm2 gamma/beta
    wf1_ref, bf1_ref,            # (E, 4E) pre-transposed, (1, 4E)
    wf2_ref, bf2_ref,            # (4E, E) pre-transposed, (1, E)
    o_ref,                       # (S, E)
    *,
    num_heads: int,
    head_dim: int,
    matmul_dtype,
):
    S = x_ref.shape[0]
    E = num_heads * head_dim
    scale = 1.0 / (head_dim ** 0.5)

    xf = x_ref[...].astype(jnp.float32)        # (S, E) f32 for residual/LN
    xc = xf.astype(matmul_dtype)               # MXU operand dtype

    # --- Q/K/V projections (separate, lane-dense outputs; no activation slicing) ---
    q = jnp.dot(xc, wq_ref[...], preferred_element_type=jnp.float32) + bq_ref[...]
    k = jnp.dot(xc, wk_ref[...], preferred_element_type=jnp.float32) + bk_ref[...]
    v = jnp.dot(xc, wv_ref[...], preferred_element_type=jnp.float32) + bv_ref[...]

    def split_heads(t):          # (S, E) f32 -> (H, S, Dh) matmul_dtype
        return jnp.transpose(
            t.reshape(S, num_heads, head_dim), (1, 0, 2)
        ).astype(matmul_dtype)

    qh = split_heads(q * scale)
    kh = split_heads(k)
    vh = split_heads(v)

    # --- batched-head scaled dot-product attention (single batched matmuls) ---
    s = jnp.einsum("hqd,hkd->hqk", qh, kh,
                   preferred_element_type=jnp.float32)          # (H, S, S) f32
    s = s - jnp.max(s, axis=-1, keepdims=True)
    p = jnp.exp(s)
    denom = jnp.sum(p, axis=-1, keepdims=True)
    p = p * pl.reciprocal(denom, approx=True)                   # EUP, not VALU

    attn = jnp.einsum("hqk,hkd->hqd", p.astype(matmul_dtype), vh,
                      preferred_element_type=jnp.float32)       # (H, S, Dh)
    attn = jnp.transpose(attn, (1, 0, 2)).reshape(S, E)         # (S, E)

    # --- output projection ---
    attn = jnp.dot(attn.astype(matmul_dtype), wo_ref[...],
                   preferred_element_type=jnp.float32) + bo_ref[...]

    # --- residual + LayerNorm 1 (dropout = identity, eval mode) ---
    x1 = _layernorm(xf + attn, g1_ref[...], b1_ref[...])

    # --- feedforward: Linear -> ReLU -> Linear ---
    ff = jnp.dot(x1.astype(matmul_dtype), wf1_ref[...],
                 preferred_element_type=jnp.float32) + bf1_ref[...]
    ff = jnp.maximum(ff, 0.0)
    ff = jnp.dot(ff.astype(matmul_dtype), wf2_ref[...],
                 preferred_element_type=jnp.float32) + bf2_ref[...]

    # --- residual + LayerNorm 2 ---
    x2 = _layernorm(x1 + ff, g2_ref[...], b2_ref[...])

    o_ref[...] = x2.astype(o_ref.dtype)


def transformer_attention_block(x_sbe, params, *, num_heads,
                                matmul_dtype=jnp.float32):
    """x_sbe: (S, B, E), PyTorch nn.MultiheadAttention default layout."""
    S, B, E = x_sbe.shape
    head_dim = E // num_heads
    md = matmul_dtype

    x = jnp.transpose(x_sbe, (1, 0, 2))                      # (B, S, E)

    def row(v):                                              # (N,) -> (1, N)
        return v.reshape(1, -1)

    # Host-side weight preprocessing: split QKV rows, transpose everything once,
    # cast MXU operands to matmul_dtype. Biases / LN params stay f32.
    w_in = params["in_proj_weight"]                          # (3E, E)
    b_in = params["in_proj_bias"]                            # (3E,)
    args = (
        w_in[:E].T.astype(md), w_in[E:2 * E].T.astype(md), w_in[2 * E:].T.astype(md),
        row(b_in[:E]), row(b_in[E:2 * E]), row(b_in[2 * E:]),
        params["out_proj_weight"].T.astype(md), row(params["out_proj_bias"]),
        row(params["norm1_gamma"]), row(params["norm1_beta"]),
        row(params["norm2_gamma"]), row(params["norm2_beta"]),
        params["ff1_weight"].T.astype(md), row(params["ff1_bias"]),
        params["ff2_weight"].T.astype(md), row(params["ff2_bias"]),
    )

    def full_spec(a):
        nd = a.ndim
        return pl.BlockSpec(a.shape, lambda b, _nd=nd: (0,) * _nd)

    kernel = functools.partial(
        _attention_block_kernel,
        num_heads=num_heads, head_dim=head_dim, matmul_dtype=md,
    )

    out = pl.pallas_call(
        kernel,
        out_shape=jax.ShapeDtypeStruct((B, S, E), x_sbe.dtype),
        grid_spec=pltpu.PrefetchScalarGridSpec(
            num_scalar_prefetch=0,
            grid=(B,),
            in_specs=[pl.BlockSpec((None, S, E), lambda b: (b, 0, 0))]
            + [full_spec(a) for a in args],
            out_specs=pl.BlockSpec((None, S, E), lambda b: (b, 0, 0)),
        ),
        compiler_params=pltpu.CompilerParams(
            dimension_semantics=("parallel",),
            vmem_limit_bytes=48 * 1024 * 1024,
        ),
    )(x, *args)

    return jnp.transpose(out, (1, 0, 2))                     # back to (S, B, E)


def reference_forward(x_sbe, params, *, num_heads):
    """Pure-JAX reference mirroring PyTorch semantics (eval mode)."""
    S, B, E = x_sbe.shape
    Dh = E // num_heads
    x = jnp.transpose(x_sbe, (1, 0, 2)).astype(jnp.float32)  # (B, S, E)

    qkv = jnp.einsum("bse,fe->bsf", x, params["in_proj_weight"]) + params["in_proj_bias"]
    q, k, v = qkv[..., :E], qkv[..., E:2 * E], qkv[..., 2 * E:]

    def split(t):  # (B, S, E) -> (B, H, S, Dh)
        return t.reshape(B, S, num_heads, Dh).transpose(0, 2, 1, 3)

    q, k, v = split(q) * (Dh ** -0.5), split(k), split(v)
    s = jnp.einsum("bhqd,bhkd->bhqk", q, k)
    p = jax.nn.softmax(s, axis=-1)
    a = jnp.einsum("bhqk,bhkd->bhqd", p, v)
    a = a.transpose(0, 2, 1, 3).reshape(B, S, E)
    a = jnp.einsum("bse,fe->bsf", a, params["out_proj_weight"]) + params["out_proj_bias"]

    def ln(z, g, b):
        mu = jnp.mean(z, -1, keepdims=True)
        var = jnp.mean((z - mu) ** 2, -1, keepdims=True)
        return (z - mu) / jnp.sqrt(var + 1e-5) * g + b

    x1 = ln(x + a, params["norm1_gamma"], params["norm1_beta"])
    ff = jnp.einsum("bse,fe->bsf", x1, params["ff1_weight"]) + params["ff1_bias"]
    ff = jnp.maximum(ff, 0.0)
    ff = jnp.einsum("bsf,ef->bse", ff, params["ff2_weight"]) + params["ff2_bias"]
    x2 = ln(x1 + ff, params["norm2_gamma"], params["norm2_beta"])
    return jnp.transpose(x2, (1, 0, 2))


def init_params(key, embed_dim):
    E = embed_dim
    ks = jax.random.split(key, 6)
    scale = 0.05
    return {
        "in_proj_weight": scale * jax.random.normal(ks[0], (3 * E, E), jnp.float32),
        "in_proj_bias": jnp.zeros((3 * E,), jnp.float32),
        "out_proj_weight": scale * jax.random.normal(ks[1], (E, E), jnp.float32),
        "out_proj_bias": jnp.zeros((E,), jnp.float32),
        "norm1_gamma": jnp.ones((E,), jnp.float32),
        "norm1_beta": jnp.zeros((E,), jnp.float32),
        "norm2_gamma": jnp.ones((E,), jnp.float32),
        "norm2_beta": jnp.zeros((E,), jnp.float32),
        "ff1_weight": scale * jax.random.normal(ks[2], (4 * E, E), jnp.float32),
        "ff1_bias": scale * jax.random.normal(ks[3], (4 * E,), jnp.float32),
        "ff2_weight": scale * jax.random.normal(ks[4], (E, 4 * E), jnp.float32),
        "ff2_bias": scale * jax.random.normal(ks[5], (E,), jnp.float32),
    }


if __name__ == "__main__":
    SEQ, BATCH, EMBED, HEADS = 8, 2, 32, 4

    key = jax.random.PRNGKey(0)
    k_x, k_p = jax.random.split(key)
    x = jax.random.normal(k_x, (SEQ, BATCH, EMBED), jnp.float32)  # (S, B, E)
    params = init_params(k_p, EMBED)

    ref = reference_forward(x, params, num_heads=HEADS)

    # f32 MXU path (tolerance slightly loosened for the EUP approx reciprocal
    # in the softmax denominator).
    out = transformer_attention_block(x, params, num_heads=HEADS)
    out = jax.block_until_ready(out)
    assert out.shape == (SEQ, BATCH, EMBED)
    assert jnp.allclose(out, ref, atol=2e-3, rtol=2e-3), "f32 mismatch vs reference"

    # bf16 MXU operands with f32 accumulation (recommended on v6e/v7x).
    out_bf16 = transformer_attention_block(
        x, params, num_heads=HEADS, matmul_dtype=jnp.bfloat16)
    out_bf16 = jax.block_until_ready(out_bf16)
    assert jnp.allclose(out_bf16, ref, atol=5e-2, rtol=5e-2), "bf16 mismatch vs reference"

    print("KERNEL_OK")
</pallas_src>

<mosaic_0001>
module attributes {stable_mosaic.version = 11 : i64} {
  func.func @_attention_block_kernel(%arg0: i32, %arg1: memref<1x8x32xf32, #tpu.memory_space<vmem>>, %arg2: memref<32x32xf32, #tpu.memory_space<vmem>>, %arg3: memref<32x32xf32, #tpu.memory_space<vmem>>, %arg4: memref<32x32xf32, #tpu.memory_space<vmem>>, %arg5: memref<1x32xf32, #tpu.memory_space<vmem>>, %arg6: memref<1x32xf32, #tpu.memory_space<vmem>>, %arg7: memref<1x32xf32, #tpu.memory_space<vmem>>, %arg8: memref<32x32xf32, #tpu.memory_space<vmem>>, %arg9: memref<1x32xf32, #tpu.memory_space<vmem>>, %arg10: memref<1x32xf32, #tpu.memory_space<vmem>>, %arg11: memref<1x32xf32, #tpu.memory_space<vmem>>, %arg12: memref<1x32xf32, #tpu.memory_space<vmem>>, %arg13: memref<1x32xf32, #tpu.memory_space<vmem>>, %arg14: memref<32x128xf32, #tpu.memory_space<vmem>>, %arg15: memref<1x128xf32, #tpu.memory_space<vmem>>, %arg16: memref<128x32xf32, #tpu.memory_space<vmem>>, %arg17: memref<1x32xf32, #tpu.memory_space<vmem>>, %arg18: memref<1x8x32xf32, #tpu.memory_space<vmem>>) attributes {dimension_semantics = [#tpu.dimension_semantics<parallel>], iteration_bounds = array<i64: 2>, scalar_prefetch = 0 : i64, scratch_operands = 0 : i64, tpu.core_type = #tpu.core_type<tc>, window_params = [{transform_indices = @transform_0, window_bounds = array<i64: 1, 8, 32>}, {pipeline_mode = #tpu.pipeline_mode<synchronous>, transform_indices = @transform_1, window_bounds = array<i64: 32, 32>}, {pipeline_mode = #tpu.pipeline_mode<synchronous>, transform_indices = @transform_2, window_bounds = array<i64: 32, 32>}, {pipeline_mode = #tpu.pipeline_mode<synchronous>, transform_indices = @transform_3, window_bounds = array<i64: 32, 32>}, {pipeline_mode = #tpu.pipeline_mode<synchronous>, transform_indices = @transform_4, window_bounds = array<i64: 1, 32>}, {pipeline_mode = #tpu.pipeline_mode<synchronous>, transform_indices = @transform_5, window_bounds = array<i64: 1, 32>}, {pipeline_mode = #tpu.pipeline_mode<synchronous>, transform_indices = @transform_6, window_bounds = array<i64: 1, 32>}, {pipeline_mode = #tpu.pipeline_mode<synchronous>, transform_indices = @transform_7, window_bounds = array<i64: 32, 32>}, {pipeline_mode = #tpu.pipeline_mode<synchronous>, transform_indices = @transform_8, window_bounds = array<i64: 1, 32>}, {pipeline_mode = #tpu.pipeline_mode<synchronous>, transform_indices = @transform_9, window_bounds = array<i64: 1, 32>}, {pipeline_mode = #tpu.pipeline_mode<synchronous>, transform_indices = @transform_10, window_bounds = array<i64: 1, 32>}, {pipeline_mode = #tpu.pipeline_mode<synchronous>, transform_indices = @transform_11, window_bounds = array<i64: 1, 32>}, {pipeline_mode = #tpu.pipeline_mode<synchronous>, transform_indices = @transform_12, window_bounds = array<i64: 1, 32>}, {pipeline_mode = #tpu.pipeline_mode<synchronous>, transform_indices = @transform_13, window_bounds = array<i64: 32, 128>}, {pipeline_mode = #tpu.pipeline_mode<synchronous>, transform_indices = @transform_14, window_bounds = array<i64: 1, 128>}, {pipeline_mode = #tpu.pipeline_mode<synchronous>, transform_indices = @transform_15, window_bounds = array<i64: 128, 32>}, {pipeline_mode = #tpu.pipeline_mode<synchronous>, transform_indices = @transform_16, window_bounds = array<i64: 1, 32>}, {transform_indices = @transform_17, window_bounds = array<i64: 1, 8, 32>}]} {
    %c0 = arith.constant 0 : index
    %c0_0 = arith.constant 0 : index
    %c0_1 = arith.constant 0 : index
    %0 = vector.load %arg1[%c0, %c0_0, %c0_1] : memref<1x8x32xf32, #tpu.memory_space<vmem>>, vector<1x8x32xf32>
    %1 = vector.shape_cast %0 : vector<1x8x32xf32> to vector<8x32xf32>
    %c0_2 = arith.constant 0 : index
    %c0_3 = arith.constant 0 : index
    %2 = vector.load %arg2[%c0_2, %c0_3] : memref<32x32xf32, #tpu.memory_space<vmem>>, vector<32x32xf32>
    %cst = arith.constant dense<0.000000e+00> : vector<8x32xf32>
    %3 = tpu.matmul %1, %2, %cst {dimension_numbers = #tpu.dot_dimension_numbers<[1], [0], [0], [1], [0, 0, 1, 1], [], []>} : vector<8x32xf32>, vector<32x32xf32>, vector<8x32xf32> -> vector<8x32xf32>
    %c0_4 = arith.constant 0 : index
    %c0_5 = arith.constant 0 : index
    %4 = vector.load %arg5[%c0_4, %c0_5] : memref<1x32xf32, #tpu.memory_space<vmem>>, vector<1x32xf32>
    %5 = vector.broadcast %4 : vector<1x32xf32> to vector<8x32xf32>
    %6 = arith.addf %3, %5 : vector<8x32xf32>
    %c0_6 = arith.constant 0 : index
    %c0_7 = arith.constant 0 : index
    %7 = vector.load %arg3[%c0_6, %c0_7] : memref<32x32xf32, #tpu.memory_space<vmem>>, vector<32x32xf32>
    %cst_8 = arith.constant dense<0.000000e+00> : vector<8x32xf32>
    %8 = tpu.matmul %1, %7, %cst_8 {dimension_numbers = #tpu.dot_dimension_numbers<[1], [0], [0], [1], [0, 0, 1, 1], [], []>} : vector<8x32xf32>, vector<32x32xf32>, vector<8x32xf32> -> vector<8x32xf32>
    %c0_9 = arith.constant 0 : index
    %c0_10 = arith.constant 0 : index
    %9 = vector.load %arg6[%c0_9, %c0_10] : memref<1x32xf32, #tpu.memory_space<vmem>>, vector<1x32xf32>
    %10 = vector.broadcast %9 : vector<1x32xf32> to vector<8x32xf32>
    %11 = arith.addf %8, %10 : vector<8x32xf32>
    %c0_11 = arith.constant 0 : index
    %c0_12 = arith.constant 0 : index
    %12 = vector.load %arg4[%c0_11, %c0_12] : memref<32x32xf32, #tpu.memory_space<vmem>>, vector<32x32xf32>
    %cst_13 = arith.constant dense<0.000000e+00> : vector<8x32xf32>
    %13 = tpu.matmul %1, %12, %cst_13 {dimension_numbers = #tpu.dot_dimension_numbers<[1], [0], [0], [1], [0, 0, 1, 1], [], []>} : vector<8x32xf32>, vector<32x32xf32>, vector<8x32xf32> -> vector<8x32xf32>
    %c0_14 = arith.constant 0 : index
    %c0_15 = arith.constant 0 : index
    %14 = vector.load %arg7[%c0_14, %c0_15] : memref<1x32xf32, #tpu.memory_space<vmem>>, vector<1x32xf32>
    %15 = vector.broadcast %14 : vector<1x32xf32> to vector<8x32xf32>
    %16 = arith.addf %13, %15 : vector<8x32xf32>
    %cst_16 = arith.constant 0.353553385 : f32
    %17 = vector.broadcast %cst_16 : f32 to vector<8x32xf32>
    %18 = arith.mulf %6, %17 : vector<8x32xf32>
    %19 = vector.shape_cast %18 : vector<8x32xf32> to vector<8x4x8xf32>
    %20 = tpu.transpose %19, [1, 0, 2] : vector<8x4x8xf32> -> vector<4x8x8xf32>
    %21 = vector.shape_cast %11 : vector<8x32xf32> to vector<8x4x8xf32>
    %22 = tpu.transpose %21, [1, 0, 2] : vector<8x4x8xf32> -> vector<4x8x8xf32>
    %23 = vector.shape_cast %16 : vector<8x32xf32> to vector<8x4x8xf32>
    %24 = tpu.transpose %23, [1, 0, 2] : vector<8x4x8xf32> -> vector<4x8x8xf32>
    "tpu.trace_start"() <{level = 10 : i32, message = "hqd,hkd->hqk"}> : () -> ()
    %cst_17 = arith.constant dense<0.000000e+00> : vector<4x8x8xf32>
    %25 = tpu.matmul %20, %22, %cst_17 {dimension_numbers = #tpu.dot_dimension_numbers<[2], [2], [1], [1], [0, 0, 0, 1, 1, 1], [0], [0]>} : vector<4x8x8xf32>, vector<4x8x8xf32>, vector<4x8x8xf32> -> vector<4x8x8xf32>
    "tpu.trace_stop"() : () -> ()
    %cst_18 = arith.constant dense<0xFF800000> : vector<4x8xf32>
    %26 = vector.multi_reduction <maximumf>, %25, %cst_18 [2] : vector<4x8x8xf32> to vector<4x8xf32>
    %27 = vector.shape_cast %26 : vector<4x8xf32> to vector<4x8x1xf32>
    %28 = vector.broadcast %27 : vector<4x8x1xf32> to vector<4x8x8xf32>
    %29 = arith.subf %25, %28 : vector<4x8x8xf32>
    %30 = math.exp %29 : vector<4x8x8xf32>
    %cst_19 = arith.constant dense<0.000000e+00> : vector<4x8xf32>
    %31 = vector.multi_reduction <add>, %30, %cst_19 [2] : vector<4x8x8xf32> to vector<4x8xf32>
    %32 = vector.shape_cast %31 : vector<4x8xf32> to vector<4x8x1xf32>
    %33 = tpu.reciprocal %32 {approx = true} : vector<4x8x1xf32> -> vector<4x8x1xf32>
    %34 = vector.broadcast %33 : vector<4x8x1xf32> to vector<4x8x8xf32>
    %35 = arith.mulf %30, %34 : vector<4x8x8xf32>
    "tpu.trace_start"() <{level = 10 : i32, message = "hqk,hkd->hqd"}> : () -> ()
    %cst_20 = arith.constant dense<0.000000e+00> : vector<4x8x8xf32>
    %36 = tpu.matmul %35, %24, %cst_20 {dimension_numbers = #tpu.dot_dimension_numbers<[2], [1], [1], [2], [0, 0, 0, 1, 1, 2], [0], [0]>} : vector<4x8x8xf32>, vector<4x8x8xf32>, vector<4x8x8xf32> -> vector<4x8x8xf32>
    "tpu.trace_stop"() : () -> ()
    %37 = tpu.transpose %36, [1, 0, 2] : vector<4x8x8xf32> -> vector<8x4x8xf32>
    %38 = vector.shape_cast %37 : vector<8x4x8xf32> to vector<8x32xf32>
    %c0_21 = arith.constant 0 : index
    %c0_22 = arith.constant 0 : index
    %39 = vector.load %arg8[%c0_21, %c0_22] : memref<32x32xf32, #tpu.memory_space<vmem>>, vector<32x32xf32>
    %cst_23 = arith.constant dense<0.000000e+00> : vector<8x32xf32>
    %40 = tpu.matmul %38, %39, %cst_23 {dimension_numbers = #tpu.dot_dimension_numbers<[1], [0], [0], [1], [0, 0, 1, 1], [], []>} : vector<8x32xf32>, vector<32x32xf32>, vector<8x32xf32> -> vector<8x32xf32>
    %c0_24 = arith.constant 0 : index
    %c0_25 = arith.constant 0 : index
    %41 = vector.load %arg9[%c0_24, %c0_25] : memref<1x32xf32, #tpu.memory_space<vmem>>, vector<1x32xf32>
    %42 = vector.broadcast %41 : vector<1x32xf32> to vector<8x32xf32>
    %43 = arith.addf %40, %42 : vector<8x32xf32>
    %44 = arith.addf %1, %43 : vector<8x32xf32>
    %c0_26 = arith.constant 0 : index
    %c0_27 = arith.constant 0 : index
    %45 = vector.load %arg10[%c0_26, %c0_27] : memref<1x32xf32, #tpu.memory_space<vmem>>, vector<1x32xf32>
    %c0_28 = arith.constant 0 : index
    %c0_29 = arith.constant 0 : index
    %46 = vector.load %arg11[%c0_28, %c0_29] : memref<1x32xf32, #tpu.memory_space<vmem>>, vector<1x32xf32>
    %cst_30 = arith.constant dense<0.000000e+00> : vector<8xf32>
    %47 = vector.multi_reduction <add>, %44, %cst_30 [1] : vector<8x32xf32> to vector<8xf32>
    %48 = vector.shape_cast %47 : vector<8xf32> to vector<8x1xf32>
    %cst_31 = arith.constant 3.200000e+01 : f32
    %49 = vector.broadcast %cst_31 : f32 to vector<8x1xf32>
    %50 = arith.divf %48, %49 : vector<8x1xf32>
    %51 = vector.broadcast %50 : vector<8x1xf32> to vector<8x32xf32>
    %52 = arith.subf %44, %51 : vector<8x32xf32>
    %53 = arith.mulf %52, %52 : vector<8x32xf32>
    %cst_32 = arith.constant dense<0.000000e+00> : vector<8xf32>
    %54 = vector.multi_reduction <add>, %53, %cst_32 [1] : vector<8x32xf32> to vector<8xf32>
    %55 = vector.shape_cast %54 : vector<8xf32> to vector<8x1xf32>
    %cst_33 = arith.constant 3.200000e+01 : f32
    %56 = vector.broadcast %cst_33 : f32 to vector<8x1xf32>
    %57 = arith.divf %55, %56 : vector<8x1xf32>
    %58 = vector.broadcast %50 : vector<8x1xf32> to vector<8x32xf32>
    %59 = arith.subf %44, %58 : vector<8x32xf32>
    %cst_34 = arith.constant 9.99999974E-6 : f32
    %60 = vector.broadcast %cst_34 : f32 to vector<8x1xf32>
    %61 = arith.addf %57, %60 : vector<8x1xf32>
    %62 = math.rsqrt %61 : vector<8x1xf32>
    %63 = vector.broadcast %62 : vector<8x1xf32> to vector<8x32xf32>
    %64 = arith.mulf %59, %63 : vector<8x32xf32>
    %65 = vector.broadcast %45 : vector<1x32xf32> to vector<8x32xf32>
    %66 = arith.mulf %64, %65 : vector<8x32xf32>
    %67 = vector.broadcast %46 : vector<1x32xf32> to vector<8x32xf32>
    %68 = arith.addf %66, %67 : vector<8x32xf32>
    %c0_35 = arith.constant 0 : index
    %c0_36 = arith.constant 0 : index
    %69 = vector.load %arg14[%c0_35, %c0_36] : memref<32x128xf32, #tpu.memory_space<vmem>>, vector<32x128xf32>
    %cst_37 = arith.constant dense<0.000000e+00> : vector<8x128xf32>
    %70 = tpu.matmul %68, %69, %cst_37 {dimension_numbers = #tpu.dot_dimension_numbers<[1], [0], [0], [1], [0, 0, 1, 1], [], []>} : vector<8x32xf32>, vector<32x128xf32>, vector<8x128xf32> -> vector<8x128xf32>
    %c0_38 = arith.constant 0 : index
    %c0_39 = arith.constant 0 : index
    %71 = vector.load %arg15[%c0_38, %c0_39] : memref<1x128xf32, #tpu.memory_space<vmem>>, vector<1x128xf32>
    %72 = vector.broadcast %71 : vector<1x128xf32> to vector<8x128xf32>
    %73 = arith.addf %70, %72 : vector<8x128xf32>
    %cst_40 = arith.constant 0.000000e+00 : f32
    %74 = vector.broadcast %cst_40 : f32 to vector<8x128xf32>
    %75 = arith.maximumf %73, %74 : vector<8x128xf32>
    %c0_41 = arith.constant 0 : index
    %c0_42 = arith.constant 0 : index
    %76 = vector.load %arg16[%c0_41, %c0_42] : memref<128x32xf32, #tpu.memory_space<vmem>>, vector<128x32xf32>
    %cst_43 = arith.constant dense<0.000000e+00> : vector<8x32xf32>
    %77 = tpu.matmul %75, %76, %cst_43 {dimension_numbers = #tpu.dot_dimension_numbers<[1], [0], [0], [1], [0, 0, 1, 1], [], []>} : vector<8x128xf32>, vector<128x32xf32>, vector<8x32xf32> -> vector<8x32xf32>
    %c0_44 = arith.constant 0 : index
    %c0_45 = arith.constant 0 : index
    %78 = vector.load %arg17[%c0_44, %c0_45] : memref<1x32xf32, #tpu.memory_space<vmem>>, vector<1x32xf32>
    %79 = vector.broadcast %78 : vector<1x32xf32> to vector<8x32xf32>
    %80 = arith.addf %77, %79 : vector<8x32xf32>
    %81 = arith.addf %68, %80 : vector<8x32xf32>
    %c0_46 = arith.constant 0 : index
    %c0_47 = arith.constant 0 : index
    %82 = vector.load %arg12[%c0_46, %c0_47] : memref<1x32xf32, #tpu.memory_space<vmem>>, vector<1x32xf32>
    %c0_48 = arith.constant 0 : index
    %c0_49 = arith.constant 0 : index
    %83 = vector.load %arg13[%c0_48, %c0_49] : memref<1x32xf32, #tpu.memory_space<vmem>>, vector<1x32xf32>
    %cst_50 = arith.constant dense<0.000000e+00> : vector<8xf32>
    %84 = vector.multi_reduction <add>, %81, %cst_50 [1] : vector<8x32xf32> to vector<8xf32>
    %85 = vector.shape_cast %84 : vector<8xf32> to vector<8x1xf32>
    %cst_51 = arith.constant 3.200000e+01 : f32
    %86 = vector.broadcast %cst_51 : f32 to vector<8x1xf32>
    %87 = arith.divf %85, %86 : vector<8x1xf32>
    %88 = vector.broadcast %87 : vector<8x1xf32> to vector<8x32xf32>
    %89 = arith.subf %81, %88 : vector<8x32xf32>
    %90 = arith.mulf %89, %89 : vector<8x32xf32>
    %cst_52 = arith.constant dense<0.000000e+00> : vector<8xf32>
    %91 = vector.multi_reduction <add>, %90, %cst_52 [1] : vector<8x32xf32> to vector<8xf32>
    %92 = vector.shape_cast %91 : vector<8xf32> to vector<8x1xf32>
    %cst_53 = arith.constant 3.200000e+01 : f32
    %93 = vector.broadcast %cst_53 : f32 to vector<8x1xf32>
    %94 = arith.divf %92, %93 : vector<8x1xf32>
    %95 = vector.broadcast %87 : vector<8x1xf32> to vector<8x32xf32>
    %96 = arith.subf %81, %95 : vector<8x32xf32>
    %cst_54 = arith.constant 9.99999974E-6 : f32
    %97 = vector.broadcast %cst_54 : f32 to vector<8x1xf32>
    %98 = arith.addf %94, %97 : vector<8x1xf32>
    %99 = math.rsqrt %98 : vector<8x1xf32>
    %100 = vector.broadcast %99 : vector<8x1xf32> to vector<8x32xf32>
    %101 = arith.mulf %96, %100 : vector<8x32xf32>
    %102 = vector.broadcast %82 : vector<1x32xf32> to vector<8x32xf32>
    %103 = arith.mulf %101, %102 : vector<8x32xf32>
    %104 = vector.broadcast %83 : vector<1x32xf32> to vector<8x32xf32>
    %105 = arith.addf %103, %104 : vector<8x32xf32>
    %c0_55 = arith.constant 0 : index
    %c0_56 = arith.constant 0 : index
    %c0_57 = arith.constant 0 : index
    %106 = vector.load %arg18[%c0_55, %c0_56, %c0_57] : memref<1x8x32xf32, #tpu.memory_space<vmem>>, vector<1x8x32xf32>
    %107 = vector.shape_cast %106 : vector<1x8x32xf32> to vector<8x32xf32>
    %108 = vector.shape_cast %105 : vector<8x32xf32> to vector<1x8x32xf32>
    tpu.vector_store %arg18[%c0_55, %c0_56, %c0_57], %108 {strides = array<i32>} : memref<1x8x32xf32, #tpu.memory_space<vmem>>, vector<1x8x32xf32>,
    return
  }
  func.func @transform_0(%arg0: i32) -> (i32, i32, i32) {
    %c0_i32 = arith.constant 0 : i32
    %c0_i32_0 = arith.constant 0 : i32
    %c0_i32_1 = arith.constant 0 : i32
    return %arg0, %c0_i32, %c0_i32_0 : i32, i32, i32
  }
  func.func @transform_1(%arg0: i32) -> (i32, i32) {
    %c0_i32 = arith.constant 0 : i32
    %c0_i32_0 = arith.constant 0 : i32
    %c0_i32_1 = arith.constant 0 : i32
    return %c0_i32, %c0_i32_0 : i32, i32
  }
  func.func @transform_2(%arg0: i32) -> (i32, i32) {
    %c0_i32 = arith.constant 0 : i32
    %c0_i32_0 = arith.constant 0 : i32
    %c0_i32_1 = arith.constant 0 : i32
    return %c0_i32, %c0_i32_0 : i32, i32
  }
  func.func @transform_3(%arg0: i32) -> (i32, i32) {
    %c0_i32 = arith.constant 0 : i32
    %c0_i32_0 = arith.constant 0 : i32
    %c0_i32_1 = arith.constant 0 : i32
    return %c0_i32, %c0_i32_0 : i32, i32
  }
  func.func @transform_4(%arg0: i32) -> (i32, i32) {
    %c0_i32 = arith.constant 0 : i32
    %c0_i32_0 = arith.constant 0 : i32
    %c0_i32_1 = arith.constant 0 : i32
    return %c0_i32, %c0_i32_0 : i32, i32
  }
  func.func @transform_5(%arg0: i32) -> (i32, i32) {
    %c0_i32 = arith.constant 0 : i32
    %c0_i32_0 = arith.constant 0 : i32
    %c0_i32_1 = arith.constant 0 : i32
    return %c0_i32, %c0_i32_0 : i32, i32
  }
  func.func @transform_6(%arg0: i32) -> (i32, i32) {
    %c0_i32 = arith.constant 0 : i32
    %c0_i32_0 = arith.constant 0 : i32
    %c0_i32_1 = arith.constant 0 : i32
    return %c0_i32, %c0_i32_0 : i32, i32
  }
  func.func @transform_7(%arg0: i32) -> (i32, i32) {
    %c0_i32 = arith.constant 0 : i32
    %c0_i32_0 = arith.constant 0 : i32
    %c0_i32_1 = arith.constant 0 : i32
    return %c0_i32, %c0_i32_0 : i32, i32
  }
  func.func @transform_8(%arg0: i32) -> (i32, i32) {
    %c0_i32 = arith.constant 0 : i32
    %c0_i32_0 = arith.constant 0 : i32
    %c0_i32_1 = arith.constant 0 : i32
    return %c0_i32, %c0_i32_0 : i32, i32
  }
  func.func @transform_9(%arg0: i32) -> (i32, i32) {
    %c0_i32 = arith.constant 0 : i32
    %c0_i32_0 = arith.constant 0 : i32
    %c0_i32_1 = arith.constant 0 : i32
    return %c0_i32, %c0_i32_0 : i32, i32
  }
  func.func @transform_10(%arg0: i32) -> (i32, i32) {
    %c0_i32 = arith.constant 0 : i32
    %c0_i32_0 = arith.constant 0 : i32
    %c0_i32_1 = arith.constant 0 : i32
    return %c0_i32, %c0_i32_0 : i32, i32
  }
  func.func @transform_11(%arg0: i32) -> (i32, i32) {
    %c0_i32 = arith.constant 0 : i32
    %c0_i32_0 = arith.constant 0 : i32
    %c0_i32_1 = arith.constant 0 : i32
    return %c0_i32, %c0_i32_0 : i32, i32
  }
  func.func @transform_12(%arg0: i32) -> (i32, i32) {
    %c0_i32 = arith.constant 0 : i32
    %c0_i32_0 = arith.constant 0 : i32
    %c0_i32_1 = arith.constant 0 : i32
    return %c0_i32, %c0_i32_0 : i32, i32
  }
  func.func @transform_13(%arg0: i32) -> (i32, i32) {
    %c0_i32 = arith.constant 0 : i32
    %c0_i32_0 = arith.constant 0 : i32
    %c0_i32_1 = arith.constant 0 : i32
    return %c0_i32, %c0_i32_0 : i32, i32
  }
  func.func @transform_14(%arg0: i32) -> (i32, i32) {
    %c0_i32 = arith.constant 0 : i32
    %c0_i32_0 = arith.constant 0 : i32
    %c0_i32_1 = arith.constant 0 : i32
    return %c0_i32, %c0_i32_0 : i32, i32
  }
  func.func @transform_15(%arg0: i32) -> (i32, i32) {
    %c0_i32 = arith.constant 0 : i32
    %c0_i32_0 = arith.constant 0 : i32
    %c0_i32_1 = arith.constant 0 : i32
    return %c0_i32, %c0_i32_0 : i32, i32
  }
  func.func @transform_16(%arg0: i32) -> (i32, i32) {
    %c0_i32 = arith.constant 0 : i32
    %c0_i32_0 = arith.constant 0 : i32
    %c0_i32_1 = arith.constant 0 : i32
    return %c0_i32, %c0_i32_0 : i32, i32
  }
  func.func @transform_17(%arg0: i32) -> (i32, i32, i32) {
    %c0_i32 = arith.constant 0 : i32
    %c0_i32_0 = arith.constant 0 : i32
    %c0_i32_1 = arith.constant 0 : i32
    return %arg0, %c0_i32, %c0_i32_0 : i32, i32, i32
  }
}

</mosaic_0001>

<bundles_post_ra>
// kernel: tpu_custom_call.1
= control target key start
LH: loop header
LB: loop body
LE: loop exit
PB: predicated region body
PF: predicated region fallthrough
CT: control target
= control target key end

     0   :  { %s3510_s0 = inlined_call_operand.hbm [shape: f32[2,8,32], index: 0, kind: input, shape index: {}]   ;;  %s3511_s1 = inlined_call_operand.vmem [shape: f32[32,32], index: 1, kind: input, shape index: {}]   ;;  %s3512_s2 = inlined_call_operand.vmem [shape: f32[32,32], index: 2, kind: input, shape index: {}]   ;;  %s3513_s3 = inlined_call_operand.vmem [shape: f32[32,32], index: 3, kind: input, shape index: {}]   ;;  %s3514_s4 = inlined_call_operand.vmem [shape: f32[1,32], index: 4, kind: input, shape index: {}]   ;;  %s3515_s5 = inlined_call_operand.vmem [shape: f32[1,32], index: 5, kind: input, shape index: {}]   ;;  %s3516_s6 = inlined_call_operand.vmem [shape: f32[1,32], index: 6, kind: input, shape index: {}]   ;;  %s3517_s7 = inlined_call_operand.vmem [shape: f32[32,32], index: 7, kind: input, shape index: {}]   ;;  %s3518_s8 = inlined_call_operand.vmem [shape: f32[1,32], index: 8, kind: input, shape index: {}]   ;;  %s3519_s9 = inlined_call_operand.vmem [shape: f32[1,32], index: 9, kind: input, shape index: {}]   ;;  %s3520_s10 = inlined_call_operand.vmem [shape: f32[1,32], index: 10, kind: input, shape index: {}]   ;;  %s3521_s11 = inlined_call_operand.vmem [shape: f32[1,32], index: 11, kind: input, shape index: {}]   ;;  %s3522_s12 = inlined_call_operand.vmem [shape: f32[1,32], index: 12, kind: input, shape index: {}]   ;;  %s3523_s13 = inlined_call_operand.vmem [shape: f32[32,128], index: 13, kind: input, shape index: {}]   ;;  %s3524_s14 = inlined_call_operand.vmem [shape: f32[1,128], index: 14, kind: input, shape index: {}]   ;;  %s3525_s15 = inlined_call_operand.vmem [shape: f32[128,32], index: 15, kind: input, shape index: {}]   ;;  %s3526_s16 = inlined_call_operand.vmem [shape: f32[1,32], index: 16, kind: input, shape index: {}]   ;;  %s3527_s17 = inlined_call_operand.hbm [shape: f32[2,8,32], index: 17, kind: output, shape index: {}]  }
   0x1   :  { %3539 = sst [smem:[#allocation12_spill]] %s3510_s0 }
   0x2   :  { %3540 = sst [smem:[#allocation13_spill]] %s3511_s1 }
   0x3   :  { %3541 = sst [smem:[#allocation14_spill]] %s3512_s2 }
   0x4   :  { %3542 = sst [smem:[#allocation15_spill]] %s3513_s3 }
   0x5   :  { %3543 = sst [smem:[#allocation16_spill]] %s3514_s4 }
   0x6   :  { %3544 = sst [smem:[#allocation17_spill]] %s3515_s5 }
   0x7   :  { %3545 = sst [smem:[#allocation18_spill]] %s3521_s11 }
   0x8   :  { %3546 = sst [smem:[#allocation19_spill]] %s3522_s12 }
   0x9   :  { %3547 = sst [smem:[#allocation20_spill]] %s3527_s17 }
   0xa   :  { %22 = vsyncpa [#allocation3], 0 }
   0xb   :  { %24 = vsyncpa [#allocation3 + $0x1], 0 }
   0xc   :  { %25 = vsyncpa [#allocation4], 0 }
   0xd   :  { %27 = vsyncpa [#allocation4 + $0x1], 0  ;;  %s3020_s24 = smov 0   ;;  %s3022_s25 = smov 0  }
   0xe   :  { %s3024_s26 = smov 0   ;;  %s3026_s27 = smov 0  }
   0xf LB: > { %3548 = sst [smem:[#allocation8_spill]] %s2903_s24  ;;  %s3041_s28 = sadd.s32 4294967295, %s2915_s27   ;;  %s2915_s27 = sphi %s3026_s27, %s3575_s27   ;;  %s2911_s26 = sphi %s3024_s26, %s3579_s26   ;;  %s2907_s25 = sphi %s3022_s25, %s3578_s25   ;;  %s2903_s24 = sphi %s3020_s24, %s3577_s24  }
  0x10   : > { %s2453_s29 = sadd.s32 4294967294, %s2915_s27   ;;  %s3045_s0 = sadd.s32 1, %s2915_s27  }
  0x11   : > { %3549 = sst [smem:[#allocation9_spill]] %s3045_s0  ;;  %s40_s30 = sadd.s32 1, %s2911_s26 }
  0x12   : > { %s37_s18 = ssub.s32 %s2915_s27, %s3045_s0  ;;  %p47_p0 = scmp.ne.s32.totalorder %s2911_s26, %s2907_s25 }
  0x13   : > { %p38_p1 = scmp.eq.s32.totalorder %s37_s18, 0  ;;  %p48_p2 = scmp.eq.s32.totalorder %s2915_s27, 0 }
  0x14   : > { %p53_p3 = scmp.ne.s32.totalorder %s2907_s25, %s2903_s24  ;;  %p54_p4 = scmp.eq.s32.totalorder %s3041_s28, 0 }
  0x15   : > { %s3057_s19 = scalar_select %p38_p1, %s2911_s26, %s40_s30  }
  0x16   : > { %p3059_p5 = por %p48_p2, %p47_p0  ;;  %p3063_p6 = por %p54_p4, %p53_p3 }
  0x17   : > { %3550 = sst [smem:[#allocation10_spill]] %s3057_s19  ;;  %p413_p7 = scmp.eq.s32.totalorder %s3041_s28, 1 }
  0x18   : > { %p419_p8 = scmp.eq.s32.totalorder %s2453_s29, 1  ;;  %p2754_p10 = scmp.lt.s32.totalorder %s2915_s27, 2 }
  0x19   : > { %p3070_p11 = por %p413_p7, %p47_p0  ;;  %s487_s23 = sand.u32 1, %s2911_s26  }
  0x1a   : > { %p3074_p12 = por %p419_p8, %p53_p3  ;;  %s2457_s30 = sshll.u32 %s2915_s27, 7 }
  0x1b   : > { %s3553_s21 = scalar_select %p3070_p11, 1, 0 }
  0x1c   : > { %s3555_s22 = scalar_select %p3074_p12, 1, 0 }
  0x1d   : > { %3554 = sst [smem:[#allocation11_spill]] %s3553_s21  ;;  %s2456_s18 = sshll.u32 %s487_s23, 3 }
  0x1e   : > { %s3556_s24 = sld [smem:[#allocation12_spill]]  ;;  %s491_s29 = scalar_lea.vmem [#allocation2], %s2456_s18 }
  0x1f   : > { %s498_s11 = sshll.u32 %s491_s29, 4  ;;  %p3087_p13 = pnand %p2754_p10, %p3059_p5  ;;  %s3091_s11 = int_to_ptr.vmem [resolvable:$true] %s498_s11 }
  0x20   : > { %s488_s0 = scalar_lea.sflag [#allocation3], %s487_s23 }
  0x21   : > { %p2821_p3 = pneg %p3087_p13 }
  0x24   : > { %s3557_s17 = smov %s3556_s24  ;;  %s3083_s12 = scalar_lea.hbm %s3556_s24, %s2457_s30 }
  0x25   : > { %s2819_s24 = scalar_lea.hbm %s3083_s12, 128  ;;  %s2824_s30 = scalar_lea.hbm %s3557_s17, 256 }
  0x26   : > { %p2820_p2 = scmp.ne.s32.totalorder %s3083_s12, %s2819_s24  ;;  %p2825_p5 = scmp.lt.u32.totalorder %s3083_s12, %s3557_s17 }
  0x27   : > { %p2826_p8 = scmp.lt.u32.totalorder %s2824_s30, %s2819_s24  ;;  %p2828_p9 = scmp.lt.u32.totalorder %s2819_s24, %s3083_s12 }
  0x28   : > { %p2822_p4 = pnand %p2821_p3, %p2820_p2 }
  0x29   : > { %p2827_p10 = por %p2826_p8, %p2825_p5 }
  0x2a   : > { %p2823_p7 = pneg %p2822_p4 }
  0x2b   : > { %p2829_p0 = por %p2828_p9, %p2827_p10 }
  0x2d   : > { %p2830_p1 = pnand %p2829_p0, %p2823_p7 }
  0x2f   : > { %2833 = shalt.err (!%p2830_p1)
}
  0x30   : > { %s2834_s23 = scalar_lea.vmem %s3091_s11, 128  ;;  %s2917_s19 = smov [#allocation2]  }
  0x31   : > { %p2835_p2 = scmp.ne.s32.totalorder %s3091_s11, %s2834_s23  ;;  %s2839_s1 = sshll.u32 %s2917_s19, 4  ;;  %s2840_s1 = int_to_ptr.vmem [resolvable:$false] %s2839_s1 }
  0x32   : > { %s2841_s18 = scalar_lea.vmem %s2840_s1, 256  ;;  %p2842_p11 = scmp.lt.s32.totalorder %s3091_s11, %s2840_s1 }
  0x33   : > { %p2837_p4 = pnand %p2835_p2, %p2821_p3  ;;  %p2843_p5 = scmp.lt.s32.totalorder %s2841_s18, %s2834_s23 }
  0x35   : > { %p2838_p12 = pneg %p2837_p4  ;;  %p2844_p8 = por %p2843_p5, %p2842_p11 }
  0x37   : > { %p2845_p9 = pnand %p2844_p8, %p2838_p12 }
  0x39   : > { %2848 = shalt.err (!%p2845_p9)
}
  0x3a   : > { %2749 = dma.hbm_to_vmem [thread:$0]  (!%p3087_p13), %s3083_s12, 128, %s3091_s11, %s488_s0  }
  0x3b   : > { %p3559_p0 = scmp.lt.s32.totalorder %s2915_s27, 3  ;;  %p3560_p1 = scmp.ge.s32.totalorder %s2915_s27, 1 }
  0x3d   : > { %p504_p3 = pnand %p3560_p1, %p3559_p0 }
  0x3e   : > { %s3125_s24 = sand.u32 (!%p504_p3), 1, %s2907_s25  }
  0x3f   : > { %507 = sbr.rel (%p504_p3) target bundleno = 2638 (0xa4e), region = 88  ;;  %s3537_s30 = sshll.u32 (!%p504_p3), %s3125_s24, 3 }
  0x40   : > { %s510_s29 = scalar_lea.sflag (!%p504_p3), [#allocation3], %s3125_s24  ;;  %s513_s21 = scalar_lea.vmem (!%p504_p3), [#allocation2], %s3537_s30 }
  0x46   : > { %2894 = dma.done.wait (%p3063_p6), %s510_s29, 128  }
  0x47   : > { %2896 = vsyncadd (%p3063_p6), %s510_s29, 4294967168  ;;  %v2918_v0 = vmov 0.0|0.0   ;;  %vm2919_vm0 = vmmov 0   ;;  %v2920_v1 = vmov 0.0   ;;  %s3561_s0 = sld [smem:[#allocation13_spill]]  ;;  %s3562_s2 = sld [smem:[#allocation14_spill]]  ;;  %v828_v33 = vlaneseq }
  0x48   : > { %2688 = vmatprep.subr.bf16.mxu1 %v2918_v0  ;;  %2566 = vmatprep.mubr.msk.f32.mxu1 %vm2919_vm0, %v2920_v1  ;;  %v3160_v10 = vld [vmem:[%s513_s21] sm:$0xff]  ;;  %vm576_vm1 = vcmask 261120   ;;  %s3563_s4 = sld [smem:[#allocation16_spill]]  ;;  %s2921_s29 = smov 120   ;;  %v2924_v31 = vmov 1983009808  }
  0x49   : > { %2601 = vmatprep.subr.mxu0 %v2920_v1  ;;  %2603 = vmatprep.mubr.msk.f32.mxu0 %vm2919_vm0, %v2920_v1  ;;  %s3564_s3 = sld [smem:[#allocation15_spill]]  ;;  %s3565_s5 = sld [smem:[#allocation17_spill]]  ;;  %v826_v32 = vunpack.c.l.s4 %v2924_v31  ;;  %v2925_v34 = vmov 1934713408   ;;  %v829_v37 = vshrl.u32 %v828_v33, 7  ;;  %vm1251_vm2 = vcmask 64512  }
  0x4a   : > { %s2922_s12 = smov 104   ;;  %s2923_s23 = smov 112   ;;  %v858_v35 = vunpack.c.l.s4 %v2925_v34  ;;  %vm2041_vm3 = vcmask 130048   ;;  %vm2043_vm4 = vcmask 195584  }
  0x4b   : > { %v827_v36 = vunpack.c.0.s8 %v826_v32  ;;  %s2926_s20 = smov 16   ;;  %s2927_s19 = smov 8  }
  0x4c   : > { %v859_v40 = vunpack.c.0.s8 %v858_v35  ;;  %s3566_s1 = sld [smem:[#allocation11_spill]]  ;;  %s3567_s21 = sld [smem:[#allocation18_spill]] }
  0x4d   : > { %v565_v2 = vld [vmem:[%s3561_s0] sm:$0xff]  ;;  %v566_v3 = vld [vmem:[%s3561_s0 + $0x8] sm:$0xff]  ;;  %v567_v4 = vld [vmem:[%s3561_s0 + $0x10] sm:$0xff]  ;;  %v3214_v41 = vsub.s32 %v827_v36, %v829_v37  ;;  %s2370_s18 = scalar_lea.sflag [#allocation4], %s3125_s24 }
  0x4e   : > { %v2689_v5 = vpack.c.bf16 %v566_v3, %v565_v2  ;;  %v568_v6 = vld [vmem:[%s3561_s0 + $0x18] sm:$0xff]  ;;  %v650_v8 = vld [vmem:[%s3562_s2] sm:$0xff]  ;;  %v651_v9 = vld [vmem:[%s3562_s2 + $0x8] sm:$0xff]  ;;  %v3216_v48 = vsub.s32 %v859_v40, %v829_v37 }
  0x4f   : > { %v2692_v7 = vpack.c.bf16 %v568_v6, %v567_v4  ;;  %v2695_v11 = vpack.c.bf16 %v651_v9, %v650_v8  ;;  %v652_v12 = vld [vmem:[%s3562_s2 + $0x10] sm:$0xff]  ;;  %v653_v13 = vld [vmem:[%s3562_s2 + $0x18] sm:$0xff]  ;;  %v2461_v15 = vld [vmem:[%s3563_s4] ss:$0 sm:$0xff]  ;;  %s3570_s4 = sld [smem:[#allocation20_spill]] }
  0x50   : > { %2690 = vmatpush3.bf16.msra.mxu1 %v2689_v5  ;;  %v2698_v14 = vpack.c.bf16 %v653_v13, %v652_v12  ;;  %v731_v20 = vld [vmem:[%s3564_s3] sm:$0xff]  ;;  %v732_v21 = vld [vmem:[%s3564_s3 + $0x8] sm:$0xff]  ;;  %v733_v27 = vld [vmem:[%s3564_s3 + $0x10] sm:$0xff] }
  0x51   : > { %2691 = vmatprep.subr.bf16.mxu1 %v2918_v0  ;;  %v2463_v22 = vld [vmem:[%s3565_s5] ss:$0 sm:$0xff]  ;;  %v2701_v23 = vpack.c.bf16 %v732_v21, %v731_v20  ;;  %v734_v28 = vld [vmem:[%s3564_s3 + $0x18] sm:$0xff] }
  0x52   : > { %v2704_v29 = vpack.c.bf16 %v734_v28, %v733_v27  ;;  %p3571_p11 = scmp.ne.s32.totalorder %s3566_s1, 0 }
  0x54   : > { %2693 = vmatpush3.bf16.msra.mxu1 %v2692_v7 }
  0x55   : > { %2694 = vmatprep.subr.bf16.mxu1 %v2918_v0 }
  0x57   : > { %2567 = vmatmul.mubr.msk.f32.vlgmr.msra.gmra.mrb[0].mxu1 %vm576_vm1, %v3160_v10 }
  0x58   : > { %2696 = vmatpush3.bf16.msra.mxu1 %v2695_v11  ;;  %2577 = vmatprep.mubr.msk.f32.mxu1 %vm2919_vm0, %v2920_v1 }
  0x59   : > { %2697 = vmatprep.subr.bf16.mxu1 %v2918_v0 }
  0x5c   : > { %2699 = vmatpush3.bf16.msra.mxu1 %v2698_v14 }
  0x5d   : > { %2700 = vmatprep.subr.bf16.mxu1 %v2918_v0 }
  0x5f   : > { %2578 = vmatmul.mubr.msk.f32.vlgmr.msra.gmra.mrb[2].mxu1 %vm576_vm1, %v3160_v10 }
  0x60   : > { %2588 = vmatprep.mubr.msk.f32.mxu1 %vm2919_vm0, %v2920_v1  ;;  %2702 = vmatpush3.bf16.msra.mxu1 %v2701_v23 }
  0x61   : > { %2703 = vmatprep.subr.bf16.mxu1 %v2918_v0 }
  0x64   : > { %2705 = vmatpush3.bf16.msra.mxu1 %v2704_v29 }
  0x65   : > { %2591 = vmatprep.subr.mxu1 %v2920_v1 }
  0x67   : > { %2589 = vmatmul.mubr.msk.f32.vlgmr.msra.gmra.mrb[4].mxu1 %vm576_vm1, %v3160_v10 }
  0x68   : > { %2593 = vmatprep.mubr.msk.f32.mxu1 %vm2919_vm0, %v2920_v1 }
 0x12a   : > { %v646_v16 = vpop.f32.mrb[0].mxu1 }
 0x12b   : > { %v647_v17 = vadd.f32 %v2461_v15, %v646_v16  ;;  %v2568_v18 = vpop.f32.mrb[1].mxu1 }
 0x12d   : > { %v3182_v19 = vmul.f32 0.35355338, %v647_v17 }
 0x12f   : > { %814 = vrot.lane.b32.xlu1 %v3182_v19, %s2921_s29 }
 0x132   : > { %v727_v24 = vpop.f32.mrb[2].mxu1 }
 0x133   : > { %v728_v25 = vadd.f32 %v2463_v22, %v727_v24  ;;  %v2579_v26 = vpop.f32.mrb[3].mxu1 }
 0x135   : > { %966 = vrot.lane.b32.xlu1 %v728_v25, %s2922_s12  ;;  %960 = vrot.lane.b32.xlu0 %v728_v25, %s2921_s29 }
 0x139   : > { %820 = vrot.lane.b32.xlu1 %v3182_v19, %s2922_s12  ;;  %963 = vrot.lane.b32.xlu0 %v728_v25, %s2923_s23 }
 0x13d   : > { %817 = vrot.lane.b32.xlu0 %v3182_v19, %s2923_s23 }
 0x1a1   : > { %v815_v30 = vpop.permute.xlu1 %814 }
 0x1a7   : > { %v967_v38 = vpop.permute.xlu1 %966  ;;  %v961_v39 = vpop.permute.xlu0 %960 }
 0x1a8   : > { %v985_v42 = vcombine.low %v961_v39, %v967_v38  ;;  %v986_v43 = vcombine.high %v961_v39, %v967_v38 }
 0x1aa   : > { %v993_v49 = vrot.slane %v985_v42, %v3214_v41  ;;  %v1000_v50 = vrot.slane %v986_v43, %v3214_v41 }
 0x1ab   : > { %v964_v44 = vpop.permute.xlu0 %963  ;;  %v821_v45 = vpop.permute.xlu1 %820 }
 0x1ac   : > { %v969_v46 = vcombine.low %v728_v25, %v964_v44  ;;  %v970_v47 = vcombine.high %v728_v25, %v964_v44  ;;  %v839_v53 = vcombine.low %v815_v30, %v821_v45  ;;  %v840_v54 = vcombine.high %v815_v30, %v821_v45 }
 0x1ae   : > { %v977_v51 = vrot.slane %v969_v46, %v3214_v41  ;;  %v984_v52 = vrot.slane %v970_v47, %v3214_v41  ;;  %v847_v4 = vrot.slane %v839_v53, %v3214_v41  ;;  %v854_v5 = vrot.slane %v840_v54, %v3214_v41 }
 0x1af   : > { %v818_v55 = vpop.permute.xlu0 %817 }
 0x1b0   : > { %v1001_v56 = vcombine.low %v977_v51, %v993_v49  ;;  %v1002_v57 = vcombine.high %v977_v51, %v993_v49  ;;  %v1017_v58 = vcombine.low %v984_v52, %v1000_v50  ;;  %v1018_v59 = vcombine.high %v984_v52, %v1000_v50 }
 0x1b1   : > { %v823_v60 = vcombine.low %v3182_v19, %v818_v55  ;;  %v824_v61 = vcombine.high %v3182_v19, %v818_v55 }
 0x1b2   : > { %v1009_v62 = vrot.slane %v1001_v56, %v3216_v48  ;;  %v1016_v63 = vrot.slane %v1002_v57, %v3216_v48  ;;  %v1025_v2 = vrot.slane %v1017_v58, %v3216_v48  ;;  %v1032_v3 = vrot.slane %v1018_v59, %v3216_v48  ;;  %v808_v59 = vpop.f32.mrb[4].mxu1 }
 0x1b3   : > { %v831_v6 = vrot.slane %v823_v60, %v3214_v41  ;;  %v838_v7 = vrot.slane %v824_v61, %v3214_v41  ;;  %v2590_v60 = vpop.f32.mrb[5].mxu1 }
 0x1b4   : > { %v1037_v8 = vcombine.low %v1009_v62, %v1016_v63  ;;  %v2469_v9 = vcombine.high %v1009_v62, %v1016_v63  ;;  %v1053_v11 = vcombine.low %v1025_v2, %v1032_v3  ;;  %v2470_v12 = vcombine.high %v1025_v2, %v1032_v3 }
 0x1b5   : > { %v855_v13 = vcombine.low %v831_v6, %v847_v4  ;;  %v856_v14 = vcombine.high %v831_v6, %v847_v4  ;;  %v871_v15 = vcombine.low %v838_v7, %v854_v5  ;;  %v872_v16 = vcombine.high %v838_v7, %v854_v5 }
 0x1b6   : > { %v1044_v17 = vrot.slane %v1037_v8, %v3214_v41  ;;  %v1052_v18 = vrot.slane %v2469_v9, %v3214_v41  ;;  %v1060_v19 = vrot.slane %v1053_v11, %v3214_v41  ;;  %v1068_v20 = vrot.slane %v2470_v12, %v3214_v41  ;;  %v2465_v12 = vld [vmem:[%s3516_s6] ss:$0 sm:$0xff] }
 0x1b7   : > { %v863_v21 = vrot.slane %v855_v13, %v3216_v48  ;;  %v870_v22 = vrot.slane %v856_v14, %v3216_v48  ;;  %v879_v23 = vrot.slane %v871_v15, %v3216_v48  ;;  %v886_v24 = vrot.slane %v872_v16, %v3216_v48 }
 0x1b8   : > { %v1069_v25 = vcombine.low %v1044_v17, %v1052_v18  ;;  %v1085_v26 = vcombine.low %v1060_v19, %v1068_v20  ;;  %v1070_v27 = vcombine.high %v1044_v17, %v1052_v18  ;;  %v1086_v28 = vcombine.high %v1060_v19, %v1068_v20 }
 0x1b9   : > { %v891_v29 = vcombine.low %v863_v21, %v870_v22  ;;  %v2467_v30 = vcombine.high %v863_v21, %v870_v22  ;;  %v907_v31 = vcombine.low %v879_v23, %v886_v24  ;;  %v2468_v32 = vcombine.high %v879_v23, %v886_v24 }
 0x1ba   : > { %v1077_v33 = vrot.slane %v1069_v25, %v3216_v48  ;;  %v1093_v34 = vrot.slane %v1085_v26, %v3216_v48  ;;  %v1084_v35 = vrot.slane %v1070_v27, %v3216_v48  ;;  %v1100_v36 = vrot.slane %v1086_v28, %v3216_v48 }
 0x1bb   : > { %v898_v37 = vrot.slane %v891_v29, %v3214_v41  ;;  %v906_v38 = vrot.slane %v2467_v30, %v3214_v41  ;;  %v914_v39 = vrot.slane %v907_v31, %v3214_v41  ;;  %v922_v40 = vrot.slane %v2468_v32, %v3214_v41 }
 0x1bc   : > { %v1101_v42 = vcombine.low %v1077_v33, %v1093_v34  ;;  %v1103_v43 = vcombine.low %v1084_v35, %v1100_v36  ;;  %v1102_v55 = vcombine.high %v1077_v33, %v1093_v34  ;;  %v1104_v57 = vcombine.high %v1084_v35, %v1100_v36 }
 0x1bd   : > { %v923_v44 = vcombine.low %v898_v37, %v906_v38  ;;  %v939_v45 = vcombine.low %v914_v39, %v922_v40  ;;  %v924_v46 = vcombine.high %v898_v37, %v906_v38  ;;  %v940_v47 = vcombine.high %v914_v39, %v922_v40 }
 0x1be   : > { %2592 = vmatpush3.xpose.msk.msra.mxu1 %vm1251_vm2, %v1101_v42  ;;  %2602 = vmatpush3.xpose.msk.msra.mxu0 %vm1251_vm2, %v1103_v43  ;;  %v809_v13 = vadd.f32 %v2465_v12, %v808_v59 }
 0x1bf   : > { %2596 = vmatprep.subr.mxu1 %v2920_v1  ;;  %v931_v49 = vrot.slane %v923_v44, %v3216_v48  ;;  %v947_v50 = vrot.slane %v939_v45, %v3216_v48  ;;  %v938_v51 = vrot.slane %v924_v46, %v3216_v48  ;;  %v954_v52 = vrot.slane %v940_v47, %v3216_v48 }
 0x1c0   : > { %2611 = vmatprep.subr.mxu0 %v2920_v1 }
 0x1c1   : > { %v955_v53 = vcombine.low %v931_v49, %v947_v50  ;;  %v957_v54 = vcombine.low %v938_v51, %v954_v52  ;;  %v956_v56 = vcombine.high %v931_v49, %v947_v50  ;;  %v958_v58 = vcombine.high %v938_v51, %v954_v52 }
 0x1c3   : > { %2594 = vmatmul.mubr.msk.f32.vlgmr.msra.gmra.mrb[6].mxu1 %vm1251_vm2, %v955_v53  ;;  %2604 = vmatmul.mubr.msk.f32.vlgmr.msra.gmra.mrb[0].mxu0 %vm1251_vm2, %v957_v54 }
 0x1c4   : > { %2597 = vmatpush3.xpose.msk.msra.mxu1 %vm1251_vm2, %v1102_v55  ;;  %2598 = vmatprep.mubr.msk.f32.mxu1 %vm2919_vm0, %v2920_v1 }
 0x1c5   : > { %2606 = vmatprep.subr.mxu1 %v2920_v1  ;;  %2613 = vmatprep.mubr.msk.f32.mxu0 %vm2919_vm0, %v2920_v1 }
 0x1c7   : > { %2599 = vmatmul.mubr.msk.f32.vlgmr.msra.gmra.mrb[8].mxu1 %vm1251_vm2, %v956_v56 }
 0x1c8   : > { %2607 = vmatpush3.xpose.msk.msra.mxu1 %vm1251_vm2, %v1104_v57  ;;  %2608 = vmatprep.mubr.msk.f32.mxu1 %vm2919_vm0, %v2920_v1 }
 0x1c9   : > { %2616 = vmatprep.subr.mxu1 %v2920_v1 }
 0x1cb   : > { %2609 = vmatmul.mubr.msk.f32.vlgmr.msra.gmra.mrb[10].mxu1 %vm1251_vm2, %v958_v58 }
 0x1cc   : > { %2618 = vmatprep.mubr.msk.f32.mxu1 %vm2919_vm0, %v2920_v1 }
 0x296   : > { %v1324_v61 = vpop.f32.mrb[6].mxu1  ;;  %v1476_v62 = vpop.f32.mrb[0].mxu0 }
 0x297   : > { %v2595_v63 = vpop.f32.mrb[7].mxu1  ;;  %v2605_v2 = vpop.f32.mrb[1].mxu0  ;;  %v1556_v3 = vsel %vm1251_vm2, %v1324_v61, -inf  ;;  %v1562_v6 = vsel %vm1251_vm2, %v1476_v62, -inf }
 0x298   : > { %1557 = vmax.xlane.f32.xlu0 %v1556_v3 }
 0x29a   : > { %v1400_v4 = vpop.f32.mrb[8].mxu1 }
 0x29b   : > { %v2600_v5 = vpop.f32.mrb[9].mxu1  ;;  %v1559_v7 = vsel %vm1251_vm2, %v1400_v4, -inf }
 0x29c   : > { %1563 = vmax.xlane.f32.xlu0 %v1562_v6  ;;  %1560 = vmax.xlane.f32.xlu1 %v1559_v7 }
 0x29e   : > { %v1552_v8 = vpop.f32.mrb[10].mxu1 }
 0x29f   : > { %v2610_v9 = vpop.f32.mrb[11].mxu1  ;;  %v1565_v11 = vsel %vm1251_vm2, %v1552_v8, -inf }
 0x2a0   : > { %1566 = vmax.xlane.f32.xlu0 %v1565_v11 }
 0x2ad   : > { %1106 = vrot.lane.b32.xlu1 %v809_v13, %s2921_s29  ;;  %s2928_s29 = smov 24  }
 0x325   : > { %v1558_v14 = vpop.xlane.xlu0 %1557 }
 0x326   : > { %v1568_v15 = vsub.f32 %v1324_v61, %v1558_v14 }
 0x328   : > { %v1572_v16 = vmul.f32 1.442695, %v1568_v15 }
 0x329   : > { %v1564_v17 = vpop.xlane.xlu0 %1563  ;;  %v1561_v18 = vpop.xlane.xlu1 %1560 }
 0x32a   : > { %2799 = vpow2.f32 %v1572_v16  ;;  %v1570_v19 = vsub.f32 %v1476_v62, %v1564_v17  ;;  %v1569_v20 = vsub.f32 %v1400_v4, %v1561_v18 }
 0x32c   : > { %v1576_v21 = vmul.f32 1.442695, %v1570_v19  ;;  %v1574_v22 = vmul.f32 1.442695, %v1569_v20 }
 0x32d   : > { %v1567_v23 = vpop.xlane.xlu0 %1566  ;;  %v1107_v34 = vpop.permute.xlu1 %1106 }
 0x32e   : > { %2801 = vpow2.f32 %v1576_v21  ;;  %v1571_v24 = vsub.f32 %v1552_v8, %v1567_v23 }
 0x32f   : > { %2803 = vpow2.f32 %v1574_v22 }
 0x330   : > { %v1578_v25 = vmul.f32 1.442695, %v1571_v24 }
 0x332   : > { %2805 = vpow2.f32 %v1578_v25 }
 0x334   : > { %v3280_v26 = vpop.eup %2799 }
 0x335   : > { %v1580_v27 = vsel %vm1251_vm2, %v3280_v26, 0.0 }
 0x336   : > { %1581 = vadd.xlane.f32.xlu1 %v1580_v27  ;;  %v2046_v27 = vld [vmem:[%s3517_s7 + $0x8] sm:$0xff] }
 0x338   : > { %v3284_v28 = vpop.eup %2801 }
 0x339   : > { %v2804_v29 = vpop.eup %2803  ;;  %v1586_v30 = vsel %vm1251_vm2, %v3284_v28, 0.0 }
 0x33a   : > { %1587 = vadd.xlane.f32.xlu1 %v1586_v30  ;;  %v1583_v31 = vsel %vm1251_vm2, %v2804_v29, 0.0 }
 0x33b   : > { %1584 = vadd.xlane.f32.xlu0 %v1583_v31 }
 0x33c   : > { %v3289_v32 = vpop.eup %2805 }
 0x33d   : > { %v1589_v33 = vsel %vm1251_vm2, %v3289_v32, 0.0 }
 0x33f   : > { %1590 = vadd.xlane.f32.xlu0 %v1589_v33 }
 0x34b   : > { %1112 = vrot.lane.b32.xlu1 %v809_v13, %s2922_s12 }
 0x355   : > { %1109 = vrot.lane.b32.xlu0 %v809_v13, %s2923_s23  ;;  %s3568_s23 = sld [smem:[#allocation19_spill]] }
 0x3c3   : > { %v1582_v35 = vpop.xlane.xlu1 %1581 }
 0x3c4   : > { %2807 = vrcp.f32 %v1582_v35 }
 0x3c7   : > { %v1588_v36 = vpop.xlane.xlu1 %1587 }
 0x3c8   : > { %v1585_v37 = vpop.xlane.xlu0 %1584 }
 0x3c9   : > { %2809 = vrcp.f32 %v1585_v37 }
 0x3ca   : > { %2811 = vrcp.f32 %v1588_v36 }
 0x3cb   : > { %v1113_v38 = vpop.permute.xlu1 %1112 }
 0x3cc   : > { %v1591_v39 = vpop.xlane.xlu0 %1590  ;;  %v1131_v40 = vcombine.low %v1107_v34, %v1113_v38  ;;  %v1132_v42 = vcombine.high %v1107_v34, %v1113_v38 }
 0x3cd   : > { %2813 = vrcp.f32 %v1591_v39 }
 0x3ce   : > { %v1139_v46 = vrot.slane %v1131_v40, %v3214_v41  ;;  %v1146_v47 = vrot.slane %v1132_v42, %v3214_v41  ;;  %v2808_v5 = vpop.eup %2807 }
 0x3cf   : > { %v1596_v20 = vmul.f32 %v2808_v5, %v3280_v26  ;;  %v2045_v26 = vld [vmem:[%s3517_s7] sm:$0xff] }
 0x3d0   : > { %v1110_v43 = vpop.permute.xlu0 %1109 }
 0x3d1   : > { %v1115_v44 = vcombine.low %v809_v13, %v1110_v43  ;;  %v1116_v45 = vcombine.high %v809_v13, %v1110_v43 }
 0x3d3   : > { %v1123_v49 = vrot.slane %v1115_v44, %v3214_v41  ;;  %v1130_v50 = vrot.slane %v1116_v45, %v3214_v41  ;;  %v2810_v11 = vpop.eup %2809 }
 0x3d4   : > { %v2812_v14 = vpop.eup %2811  ;;  %v1597_v21 = vmul.f32 %v2810_v11, %v2804_v29 }
 0x3d5   : > { %v1147_v51 = vcombine.low %v1123_v49, %v1139_v46  ;;  %v1148_v52 = vcombine.high %v1123_v49, %v1139_v46  ;;  %v1163_v53 = vcombine.low %v1130_v50, %v1146_v47  ;;  %v1164_v54 = vcombine.high %v1130_v50, %v1146_v47 }
 0x3d6   : > { %v1598_v24 = vmul.f32 %v2812_v14, %v3284_v28  ;;  %v2707_v28 = vpack.c.bf16 %v2046_v27, %v2045_v26 }
 0x3d7   : > { %v1155_v55 = vrot.slane %v1147_v51, %v3216_v48  ;;  %v1162_v56 = vrot.slane %v1148_v52, %v3216_v48  ;;  %v1171_v57 = vrot.slane %v1163_v53, %v3216_v48  ;;  %v1178_v58 = vrot.slane %v1164_v54, %v3216_v48  ;;  %v2814_v19 = vpop.eup %2813  ;;  %v2047_v51 = vld [vmem:[%s3517_s7 + $0x10] sm:$0xff]  ;;  %v2048_v52 = vld [vmem:[%s3517_s7 + $0x18] sm:$0xff] }
 0x3d8   : > { %v1599_v25 = vmul.f32 %v2814_v19, %v3289_v32 }
 0x3d9   : > { %v1183_v59 = vcombine.low %v1155_v55, %v1162_v56  ;;  %v2471_v60 = vcombine.high %v1155_v55, %v1162_v56  ;;  %v1199_v61 = vcombine.low %v1171_v57, %v1178_v58  ;;  %v2472_v62 = vcombine.high %v1171_v57, %v1178_v58 }
 0x3da   : > { %v2710_v57 = vpack.c.bf16 %v2048_v52, %v2047_v51  ;;  %v2254_v51 = vld [vmem:[%s3525_s15 + $0x48] sm:$0xff] }
 0x3db   : > { %v1190_v63 = vrot.slane %v1183_v59, %v3214_v41  ;;  %v1198_v2 = vrot.slane %v2471_v60, %v3214_v41  ;;  %v1206_v3 = vrot.slane %v1199_v61, %v3214_v41  ;;  %v1214_v4 = vrot.slane %v2472_v62, %v3214_v41 }
 0x3dd   : > { %v1215_v6 = vcombine.low %v1190_v63, %v1198_v2  ;;  %v1231_v7 = vcombine.low %v1206_v3, %v1214_v4  ;;  %v1216_v8 = vcombine.high %v1190_v63, %v1198_v2  ;;  %v1232_v9 = vcombine.high %v1206_v3, %v1214_v4 }
 0x3df   : > { %v1223_v12 = vrot.slane %v1215_v6, %v3216_v48  ;;  %v1239_v13 = vrot.slane %v1231_v7, %v3216_v48  ;;  %v1230_v15 = vrot.slane %v1216_v8, %v3216_v48  ;;  %v1246_v16 = vrot.slane %v1232_v9, %v3216_v48 }
 0x3e1   : > { %v1247_v17 = vcombine.low %v1223_v12, %v1239_v13  ;;  %v1248_v18 = vcombine.high %v1223_v12, %v1239_v13  ;;  %v1249_v22 = vcombine.low %v1230_v15, %v1246_v16  ;;  %v1250_v23 = vcombine.high %v1230_v15, %v1246_v16 }
 0x3e3   : > { %2612 = vmatpush3.msra.mxu0 %v1247_v17  ;;  %2617 = vmatpush3.msra.mxu1 %v1248_v18 }
 0x3e4   : > { %2614 = vmatmul.mubr.msk.f32.vlgmr.msra.gmra.mrb[2].mxu0 %vm1251_vm2, %v1596_v20  ;;  %2619 = vmatmul.mubr.msk.f32.vlgmr.msra.gmra.mrb[12].mxu1 %vm1251_vm2, %v1597_v21 }
 0x3e5   : > { %2621 = vmatprep.subr.mxu0 %v2920_v1  ;;  %2626 = vmatprep.subr.mxu1 %v2920_v1 }
 0x3e6   : > { %2622 = vmatpush3.msra.mxu0 %v1249_v22  ;;  %2627 = vmatpush3.msra.mxu1 %v1250_v23 }
 0x3e7   : > { %2623 = vmatprep.mubr.msk.f32.mxu0 %vm2919_vm0, %v2920_v1  ;;  %2628 = vmatprep.mubr.msk.f32.mxu1 %vm2919_vm0, %v2920_v1 }
 0x3e8   : > { %2624 = vmatmul.mubr.msk.f32.vlgmr.msra.gmra.mrb[4].mxu0 %vm1251_vm2, %v1598_v24  ;;  %2629 = vmatmul.mubr.msk.f32.vlgmr.msra.gmra.mrb[14].mxu1 %vm1251_vm2, %v1599_v25 }
 0x3e9   : > { %2706 = vmatprep.subr.bf16.mxu0 %v2918_v0  ;;  %2639 = vmatprep.mubr.msk.f32.mxu0 %vm2919_vm0, %v2920_v1 }
 0x3ea   : > { %2712 = vmatprep.subr.bf16.mxu1 %v2918_v0  ;;  %2650 = vmatprep.mubr.msk.f32.mxu1 %vm2919_vm0, %v2920_v1 }
 0x3eb   : > { %2708 = vmatpush3.bf16.msra.mxu0 %v2707_v28 }
 0x3ec   : > { %2709 = vmatprep.subr.bf16.mxu0 %v2918_v0 }
 0x3ef   : > { %2711 = vmatpush3.bf16.msra.mxu0 %v2710_v57  ;;  %v2258_v57 = vld [vmem:[%s3525_s15 + $0x68] sm:$0xff] }
 0x3f0   : > { %2718 = vmatprep.subr.bf16.mxu0 %v2918_v0 }
 0x4b7   : > { %v1669_v29 = vpop.f32.mrb[2].mxu0  ;;  %v1742_v30 = vpop.f32.mrb[12].mxu1 }
 0x4b8   : > { %v2615_v31 = vpop.f32.mrb[3].mxu0  ;;  %v2620_v32 = vpop.f32.mrb[13].mxu1 }
 0x4b9   : > { %v2161_v32 = vld [vmem:[%s3523_s13 + $0x8] sm:$0xff] }
 0x4bb   : > { %v1815_v33 = vpop.f32.mrb[4].mxu0  ;;  %v1888_v34 = vpop.f32.mrb[14].mxu1 }
 0x4bc   : > { %v1892_v35 = vcombine.low %v1669_v29, %v1815_v33  ;;  %v1893_v36 = vcombine.high %v1669_v29, %v1815_v33  ;;  %v1908_v37 = vcombine.low %v1742_v30, %v1888_v34  ;;  %v1909_v38 = vcombine.high %v1742_v30, %v1888_v34  ;;  %v2625_v39 = vpop.f32.mrb[5].mxu0  ;;  %v2630_v40 = vpop.f32.mrb[15].mxu1  ;;  %v2163_v34 = vld [vmem:[%s3523_s13 + $0x18] sm:$0xff] }
 0x4bd   : > { %v2248_v40 = vld [vmem:[%s3525_s15 + $0x18] sm:$0xff] }
 0x4be   : > { %v1900_v42 = vrot.slane %v1892_v35, %v3214_v41  ;;  %v1907_v43 = vrot.slane %v1893_v36, %v3214_v41  ;;  %v1916_v44 = vrot.slane %v1908_v37, %v3214_v41  ;;  %v1923_v45 = vrot.slane %v1909_v38, %v3214_v41  ;;  %v2245_v36 = vld [vmem:[%s3525_s15] sm:$0xff]  ;;  %v2246_v37 = vld [vmem:[%s3525_s15 + $0x8] sm:$0xff]  ;;  %v2247_v38 = vld [vmem:[%s3525_s15 + $0x10] sm:$0xff] }
 0x4bf   : > { %v2719_v39 = vpack.c.bf16 %v2246_v37, %v2245_v36 }
 0x4c0   : > { %v1924_v46 = vcombine.low %v1900_v42, %v1916_v44  ;;  %v1925_v47 = vcombine.high %v1900_v42, %v1916_v44  ;;  %v1940_v49 = vcombine.low %v1907_v43, %v1923_v45  ;;  %v1941_v50 = vcombine.high %v1907_v43, %v1923_v45  ;;  %v2249_v43 = vld [vmem:[%s3525_s15 + $0x20] sm:$0xff]  ;;  %v2250_v44 = vld [vmem:[%s3525_s15 + $0x28] sm:$0xff] }
 0x4c1   : > { %v2722_v42 = vpack.c.bf16 %v2248_v40, %v2247_v38  ;;  %v2725_v45 = vpack.c.bf16 %v2250_v44, %v2249_v43 }
 0x4c2   : > { %v1932_v53 = vrot.slane %v1924_v46, %v3216_v48  ;;  %v1939_v54 = vrot.slane %v1925_v47, %v3216_v48  ;;  %v1948_v55 = vrot.slane %v1940_v49, %v3216_v48  ;;  %v1955_v56 = vrot.slane %v1941_v50, %v3216_v48  ;;  %v2251_v46 = vld [vmem:[%s3525_s15 + $0x30] sm:$0xff]  ;;  %v2252_v47 = vld [vmem:[%s3525_s15 + $0x38] sm:$0xff]  ;;  %v2253_v50 = vld [vmem:[%s3525_s15 + $0x40] sm:$0xff] }
 0x4c3   : > { %v2728_v49 = vpack.c.bf16 %v2252_v47, %v2251_v46  ;;  %v2731_v52 = vpack.c.bf16 %v2254_v51, %v2253_v50 }
 0x4c4   : > { %v1960_v58 = vcombine.low %v1932_v53, %v1939_v54  ;;  %v2485_v59 = vcombine.high %v1932_v53, %v1939_v54  ;;  %v1976_v60 = vcombine.low %v1948_v55, %v1955_v56  ;;  %v2486_v61 = vcombine.high %v1948_v55, %v1955_v56  ;;  %v2255_v53 = vld [vmem:[%s3525_s15 + $0x50] sm:$0xff]  ;;  %v2256_v54 = vld [vmem:[%s3525_s15 + $0x58] sm:$0xff]  ;;  %v2257_v56 = vld [vmem:[%s3525_s15 + $0x60] sm:$0xff] }
 0x4c5   : > { %v2734_v55 = vpack.c.bf16 %v2256_v54, %v2255_v53 }
 0x4c6   : > { %v1967_v62 = vrot.slane %v1960_v58, %v3214_v41  ;;  %v1975_v63 = vrot.slane %v2485_v59, %v3214_v41  ;;  %v1983_v2 = vrot.slane %v1976_v60, %v3214_v41  ;;  %v1991_v3 = vrot.slane %v2486_v61, %v3214_v41 }
 0x4c7   : > { %v2737_v58 = vpack.c.bf16 %v2258_v57, %v2257_v56 }
 0x4c8   : > { %v1993_v4 = vcombine.high %v1967_v62, %v1975_v63  ;;  %v2009_v5 = vcombine.high %v1983_v2, %v1991_v3  ;;  %v1992_v6 = vcombine.low %v1967_v62, %v1975_v63  ;;  %v2008_v7 = vcombine.low %v1983_v2, %v1991_v3  ;;  %v2489_v63 = vld [vmem:[%s3519_s9] ss:$0 sm:$0xff] }
 0x4c9   : > { %v2490_v3 = vld [vmem:[%s3520_s10] ss:$0 sm:$0xff] }
 0x4ca   : > { %v2007_v8 = vrot.slane %v1993_v4, %v3216_v48  ;;  %v2023_v9 = vrot.slane %v2009_v5, %v3216_v48  ;;  %v2000_v11 = vrot.slane %v1992_v6, %v3216_v48  ;;  %v2016_v12 = vrot.slane %v2008_v7, %v3216_v48  ;;  %v2487_v48 = vld [vmem:[%s3518_s8] ss:$0 sm:$0xff]  ;;  %v2260_v6 = vld [vmem:[%s3525_s15 + $0x78] sm:$0xff] }
 0x4cc   : > { %v2026_v13 = vcombine.low %v2007_v8, %v2023_v9  ;;  %v2025_v14 = vcombine.high %v2000_v11, %v2016_v12  ;;  %v2027_v15 = vcombine.high %v2007_v8, %v2023_v9  ;;  %v2024_v16 = vcombine.low %v2000_v11, %v2016_v12  ;;  %v2491_v8 = vld [vmem:[%s3524_s14] ss:$0 sm:$0xff] }
 0x4ce   : > { %2033 = vrot.lane.b32.xlu0 %v2026_v13, %s2926_s20  ;;  %2029 = vrot.lane.b32.xlu1 %v2025_v14, %s2927_s19  ;;  %v2493_v14 = vld [vmem:[%s3526_s16] ss:$0 sm:$0xff]  ;;  %s2497_s20 = sshll.u32 %s3041_s28, 7  ;;  %s3569_s19 = sshll.u32 %s3125_s24, 3 }
 0x4cf   : > { %s3465_s5 = scalar_lea.hbm %s3570_s4, %s2497_s20  ;;  %s2929_s28 = smov [#allocation5]  }
 0x4d2   : > { %2037 = vrot.lane.b32.xlu1 %v2027_v15, %s2928_s29  ;;  %s563_s29 = scalar_lea.vmem [#allocation5], %s3569_s19 }
 0x4d3   : > { %s2383_s0 = sshll.u32 %s563_s29, 4  ;;  %s3467_s0 = int_to_ptr.vmem [resolvable:$true] %s2383_s0 }
 0x4d4   : > { %s2849_s30 = scalar_lea.vmem %s3467_s0, 128 }
 0x4d5   : > { %p2850_p6 = scmp.ne.s32.totalorder %s3467_s0, %s2849_s30 }
 0x4d7   : > { %p2851_p12 = pnand %p2850_p6, %p3571_p11 }
 0x4d9   : > { %p2852_p13 = pneg %p2851_p12 }
 0x540   : > { %v2030_v41 = vpop.permute.xlu1 %2029  ;;  %v2034_v17 = vpop.permute.xlu0 %2033 }
 0x541   : > { %v2040_v18 = vsel %vm1251_vm2, %v2024_v16, %v2030_v41 }
 0x542   : > { %v2042_v20 = vsel %vm2041_vm3, %v2040_v18, %v2034_v17 }
 0x544   : > { %v2038_v19 = vpop.permute.xlu1 %2037 }
 0x545   : > { %v2044_v21 = vsel %vm2043_vm4, %v2042_v20, %v2038_v19 }
 0x546   : > { %2640 = vmatmul.mubr.msk.f32.vlgmr.msra.gmra.mrb[6].mxu0 %vm576_vm1, %v2044_v21 }
 0x547   : > { %2685 = vmatprep.mubr.msk.f32.mxu0 %vm2919_vm0, %v2920_v1  ;;  %v2160_v1 = vld [vmem:[%s3523_s13] sm:$0xff]  ;;  %2720 = vmatpush3.bf16.msra.mxu0 %v2719_v39 }
 0x548   : > { %v2713_v33 = vpack.c.bf16 %v2161_v32, %v2160_v1  ;;  %2721 = vmatprep.subr.bf16.mxu0 %v2918_v0 }
 0x54a   : > { %2714 = vmatpush3.bf16.msra.mxu1 %v2713_v33 }
 0x54b   : > { %2715 = vmatprep.subr.bf16.mxu1 %v2918_v0  ;;  %2723 = vmatpush3.bf16.msra.mxu0 %v2722_v42 }
 0x54c   : > { %2724 = vmatprep.subr.bf16.mxu0 %v2918_v0 }
 0x54f   : > { %2726 = vmatpush3.bf16.msra.mxu0 %v2725_v45 }
 0x550   : > { %2727 = vmatprep.subr.bf16.mxu0 %v2918_v0 }
 0x553   : > { %2729 = vmatpush3.bf16.msra.mxu0 %v2728_v49 }
 0x554   : > { %2730 = vmatprep.subr.bf16.mxu0 %v2918_v0 }
 0x557   : > { %2732 = vmatpush3.bf16.msra.mxu0 %v2731_v52 }
 0x558   : > { %2733 = vmatprep.subr.bf16.mxu0 %v2918_v0 }
 0x55b   : > { %2735 = vmatpush3.bf16.msra.mxu0 %v2734_v55 }
 0x55c   : > { %2736 = vmatprep.subr.bf16.mxu0 %v2918_v0 }
 0x55f   : > { %2738 = vmatpush3.bf16.msra.mxu0 %v2737_v58 }
 0x560   : > { %2739 = vmatprep.subr.bf16.mxu0 %v2918_v0  ;;  %v2259_v0 = vld [vmem:[%s3525_s15 + $0x70] sm:$0xff] }
 0x561   : > { %v2740_v7 = vpack.c.bf16 %v2260_v6, %v2259_v0 }
 0x563   : > { %2741 = vmatpush3.bf16.msra.mxu0 %v2740_v7 }
 0x619   : > { %v2125_v22 = vpop.f32.mrb[6].mxu0 }
 0x61a   : > { %v2126_v23 = vadd.f32 %v2487_v48, %v2125_v22  ;;  %v2641_v24 = vpop.f32.mrb[7].mxu0 }
 0x61c   : > { %v2129_v25 = vadd.f32 %v2126_v23, %v3160_v10  ;;  %v2162_v10 = vld [vmem:[%s3523_s13 + $0x10] sm:$0xff] }
 0x61d   : > { %v2716_v35 = vpack.c.bf16 %v2163_v34, %v2162_v10 }
 0x61e   : > { %v2132_v26 = vsel %vm576_vm1, %v2129_v25, 0.0 }
 0x61f   : > { %2133 = vadd.xlane.f32.xlu0 %v2132_v26  ;;  %2717 = vmatpush3.bf16.msra.mxu1 %v2716_v35 }
 0x6ac   : > { %v2134_v27 = vpop.xlane.xlu0 %2133 }
 0x6ad   : > { %v2136_v28 = vmul.f32 0.03125, %v2134_v27  ;;  %v2494_v27 = vld [vmem:[%s3567_s21] ss:$0 sm:$0xff]  ;;  %s2853_s21 = sshll.u32 %s2929_s28, 4  ;;  %s2854_s21 = int_to_ptr.vmem [resolvable:$false] %s2853_s21 }
 0x6ae   : > { %s2855_s11 = scalar_lea.vmem %s2854_s21, 256  ;;  %p2856_p7 = scmp.lt.s32.totalorder %s3467_s0, %s2854_s21 }
 0x6af   : > { %v2137_v29 = vsub.f32 %v2129_v25, %v2136_v28  ;;  %p2857_p10 = scmp.lt.s32.totalorder %s2855_s11, %s2849_s30 }
 0x6b1   : > { %v2138_v30 = vmul.f32 %v2137_v29, %v2137_v29  ;;  %p2858_p2 = por %p2857_p10, %p2856_p7 }
 0x6b3   : > { %v2139_v31 = vsel %vm576_vm1, %v2138_v30, 0.0  ;;  %p2859_p4 = pnand %p2858_p2, %p2852_p13 }
 0x6b4   : > { %2140 = vadd.xlane.f32.xlu1 %v2139_v31 }
 0x741   : > { %v2141_v59 = vpop.xlane.xlu1 %2140 }
 0x742   : > { %v2142_v60 = vmul.f32 0.03125, %v2141_v59 }
 0x744   : > { %v2143_v61 = vadd.f32 1e-05, %v2142_v60 }
 0x746   : > { %2815 = vrsqrt.f32 %v2143_v61 }
 0x750   : > { %v2816_v62 = vpop.eup %2815 }
 0x751   : > { %v2145_v2 = vmul.f32 %v2816_v62, %v2137_v29  ;;  %v2495_v29 = vld [vmem:[%s3568_s23] ss:$0 sm:$0xff] }
 0x753   : > { %v2152_v4 = vmul.f32 %v2489_v63, %v2145_v2 }
 0x755   : > { %v2159_v5 = vadd.f32 %v2490_v3, %v2152_v4 }
 0x757   : > { %2651 = vmatmul.mubr.msk.f32.vlgmr.msra.gmra.mrb[16].mxu1 %vm576_vm1, %v2159_v5 }
 0x82a   : > { %v2240_v9 = vpop.f32.mrb[16].mxu1 }
 0x82b   : > { %v2241_v11 = vadd.f32 %v2491_v8, %v2240_v9  ;;  %v2652_v12 = vpop.f32.mrb[17].mxu1 }
 0x82d   : > { %v2244_v13 = vmax.f32 %v2241_v11, 0.0 }
 0x82f   : > { %2686 = vmatmul.mubr.f32.vlgmr.msra.gmra.mrb[8].mxu0 %v2244_v13 }
 0x902   : > { %v2334_v15 = vpop.f32.mrb[8].mxu0 }
 0x903   : > { %v2335_v16 = vadd.f32 %v2493_v14, %v2334_v15  ;;  %v2687_v41 = vpop.f32.mrb[9].mxu0 }
 0x905   : > { %v2338_v17 = vadd.f32 %v2335_v16, %v2159_v5 }
 0x907   : > { %v2341_v18 = vsel %vm576_vm1, %v2338_v17, 0.0 }
 0x908   : > { %2342 = vadd.xlane.f32.xlu0 %v2341_v18 }
 0x995   : > { %v2343_v19 = vpop.xlane.xlu0 %2342 }
 0x996   : > { %v2344_v20 = vmul.f32 0.03125, %v2343_v19 }
 0x998   : > { %v2345_v21 = vsub.f32 %v2338_v17, %v2344_v20 }
 0x99a   : > { %v2346_v48 = vmul.f32 %v2345_v21, %v2345_v21 }
 0x99c   : > { %v2347_v22 = vsel %vm576_vm1, %v2346_v48, 0.0 }
 0x99d   : > { %2348 = vadd.xlane.f32.xlu0 %v2347_v22 }
 0xa2a   : > { %v2349_v23 = vpop.xlane.xlu0 %2348 }
 0xa2b   : > { %v2350_v24 = vmul.f32 0.03125, %v2349_v23 }
 0xa2d   : > { %v2351_v25 = vadd.f32 1e-05, %v2350_v24 }
 0xa2f   : > { %2817 = vrsqrt.f32 %v2351_v25 }
 0xa39   : > { %v2818_v26 = vpop.eup %2817 }
 0xa3a   : > { %v2353_v28 = vmul.f32 %v2818_v26, %v2345_v21 }
 0xa3c   : > { %v2360_v30 = vmul.f32 %v2494_v27, %v2353_v28 }
 0xa3e   : > { %v2367_v31 = vadd.f32 %v2495_v29, %v2360_v30 }
 0xa40   : > { %2368 = vst.msk [vmem:[%s563_s29] sm:$0xff] %vm576_vm1, %v2367_v31 }
 0xa41   : > { %2862 = shalt.err (!%p2859_p4)
}
 0xa42   : > { %s2863_s2 = scalar_lea.hbm %s3465_s5, 128  ;;  %s2867_s12 = scalar_lea.hbm %s3570_s4, 256 }
 0xa43   : > { %p2864_p5 = scmp.ne.s32.totalorder %s3465_s5, %s2863_s2  ;;  %p2868_p0 = scmp.lt.u32.totalorder %s3465_s5, %s3570_s4 }
 0xa44   : > { %p2869_p1 = scmp.lt.u32.totalorder %s2867_s12, %s2863_s2  ;;  %p2871_p6 = scmp.lt.u32.totalorder %s2863_s2, %s3465_s5 }
 0xa45   : > { %p2865_p8 = pnand %p2864_p5, %p3571_p11 }
 0xa46   : > { %p2870_p3 = por %p2869_p1, %p2868_p0 }
 0xa47   : > { %p2866_p9 = pneg %p2865_p8 }
 0xa48   : > { %p2872_p12 = por %p2871_p6, %p2870_p3 }
 0xa4a   : > { %p2873_p13 = pnand %p2872_p12, %p2866_p9 }
 0xa4c   : > { %2876 = shalt.err (!%p2873_p13)
}
 0xa4d   : > { %2744 = dma.vmem_to_hbm [thread:$0]  (%p3571_p11), %s3467_s0, 128, %s3465_s5, %s2370_s18  }
 0xa4e PF: > { %s3572_s19 = sld [smem:[#allocation8_spill]]  ;;  %p3573_p7 = scmp.ne.s32.totalorder %s3555_s22, 0 }
 0xa4f   : > { %p3574_p10 = scmp.ge.s32.totalorder %s2915_s27, 2 }
 0xa51   : > { %p2751_p2 = pnand %p3574_p10, %p3573_p7 }
 0xa54   : > { %s2395_s29 = sand.u32 1, %s3572_s19  }
 0xa55   : > { %s2396_s30 = scalar_lea.sflag [#allocation4], %s2395_s29 }
 0xa56   : > { %2898 = dma.done.wait (!%p2751_p2), %s2396_s30, 128  }
 0xa57   : > { %2900 = vsyncadd (!%p2751_p2), %s2396_s30, 4294967168  ;;  %s3575_s27 = sld [smem:[#allocation9_spill]]  ;;  %s3576_s28 = sld [smem:[#allocation10_spill]] }
 0xa58   : > { %s3577_s24 = smov %s2907_s25  ;;  %s3578_s25 = smov %s2911_s26 }
 0xa5d   : > { %p30_p4 = scmp.ge.s32.totalorder %s3575_s27, 4   ;;  %s3579_s26 = smov %s3576_s28 }
 0xa5f   :  { %32 = sbr.rel (!%p30_p4) target bundleno = 15 (0xf), region = 133 }
 0xa66   :  { %2401 = vsyncpa [#allocation3], 1 }
 0xa67   :  { %2403 = vsyncpa [#allocation3 + $0x1], 1 }
 0xa68   :  { %2404 = vsyncpa [#allocation4], 1 }
 0xa69   :  { %2406 = vsyncpa [#allocation4 + $0x1], 1 }

</bundles_post_ra>
